<compile_context>
chip_gen: v6e
topology: v6e:2x2x1
jax: 0.10.0
libtpu: 0.0.40
codegen_flags: <defaults>
</compile_context>

<pallas_src>
import math
import functools

import jax
import jax.numpy as jnp
from jax import lax
from jax.experimental import pallas as pl
from jax.experimental.pallas import tpu as pltpu


def _round_up(x: int, m: int) -> int:
    return ((x + m - 1) // m) * m


# ----------------------------------------------------------------------------
# Pallas kernel: fused multi-hot @ block-diagonal table
# ----------------------------------------------------------------------------
def _fused_embedding_kernel(ids_ref, table_ref, out_ref, *, n_slots: int):
    # ids_ref:   (tile_n, n_slots) int32  ids already offset into the fused vocab
    # table_ref: (v_pad, d_pad)    f32    block-diagonal fused table (zero padded)
    # out_ref:   (tile_n, d_pad)   f32    concatenated per-table embeddings
    tile_n = ids_ref.shape[0]
    v_pad = table_ref.shape[0]

    # column index along lanes (2-D iota; TPU-safe)
    col = lax.broadcasted_iota(jnp.int32, (tile_n, v_pad), 1)

    # multi-hot counts over all lookup slots (static unroll; n_slots is tiny).
    # Disjoint vocab ranges per table + block-diagonal table  =>  one matmul
    # performs every Embedding lookup and every EmbeddingBag 'sum' at once.
    counts = (ids_ref[:, 0:1] == col).astype(jnp.float32)
    for j in range(1, n_slots):
        counts = counts + (ids_ref[:, j:j + 1] == col).astype(jnp.float32)

    out_ref[...] = jnp.dot(counts, table_ref[...],
                           preferred_element_type=jnp.float32)


def _fused_lookup_pallas(ids: jax.Array, fused_table: jax.Array,
                         d_total: int) -> jax.Array:
    """ids: (N, n_slots) int32 (offset into fused vocab), fused_table: (V_pad, D_pad).
    Returns (N, d_total) f32 = concat of every table's lookup, in table order."""
    n, n_slots = ids.shape
    v_pad, d_pad = fused_table.shape

    # keep the (tile, v_pad) f32 counts intermediate bounded (~2 MiB)
    counts_budget = 2 * 1024 * 1024
    cap = max(8, ((counts_budget // (v_pad * 4)) // 8) * 8)
    tile = min(1024, cap, _round_up(n, 8))
    n_pad = pl.cdiv(n, tile) * tile
    if n_pad != n:
        ids = jnp.pad(ids, ((0, n_pad - n), (0, 0)))  # padded ids -> fused row 0 (valid)

    out = pl.pallas_call(
        functools.partial(_fused_embedding_kernel, n_slots=n_slots),
        out_shape=jax.ShapeDtypeStruct((n_pad, d_pad), jnp.float32),
        grid=(n_pad // tile,),
        in_specs=[
            pl.BlockSpec((tile, n_slots), lambda i: (i, 0)),   # ids tile
            pl.BlockSpec((v_pad, d_pad), lambda i: (0, 0)),    # table stays VMEM-resident
        ],
        out_specs=pl.BlockSpec((tile, d_pad), lambda i: (i, 0)),
        compiler_params=pltpu.CompilerParams(
            dimension_semantics=("parallel",)),                # dual-TC on v7x
    )(ids, fused_table)

    return out[:n, :d_total]


# ----------------------------------------------------------------------------
# MultiEmbedding module equivalent
# ----------------------------------------------------------------------------
class MultiEmbedding:
    def __init__(self, embedding_sizes, categorical_groups, embedding_paddings,
                 x_categoricals, max_embedding_size=None, *, key):
        self.embedding_sizes = {k: list(v) for k, v in embedding_sizes.items()}
        self.categorical_groups = categorical_groups
        self.embedding_paddings = embedding_paddings
        self.x_categoricals = x_categoricals
        self.max_embedding_size = max_embedding_size

        # ---- per-name tables (match nn.Embedding / EmbeddingBag init shapes) ----
        self.tables = {}
        keys = jax.random.split(key, len(self.embedding_sizes))
        for sub, name in zip(keys, self.embedding_sizes):
            vocab, dim = self.embedding_sizes[name]
            if max_embedding_size is not None:
                dim = min(dim, max_embedding_size)
            self.embedding_sizes[name][1] = dim
            tbl = jax.random.normal(sub, (vocab, dim), dtype=jnp.float32)
            if name not in categorical_groups and name in embedding_paddings:
                tbl = tbl.at[0].set(0.0)  # nn.Embedding(padding_idx=0): row 0 == zeros
            self.tables[name] = tbl

        # ---- fuse all tables into one block-diagonal slab (built once) ----------
        names = list(self.tables.keys())
        v_total = sum(self.embedding_sizes[n][0] for n in names)
        d_total = sum(self.embedding_sizes[n][1] for n in names)
        v_pad = _round_up(max(v_total, 8), 128)    # lane-aligned counts matrix
        d_pad = _round_up(max(d_total, 128), 128)  # lane-dense output stores

        fused = jnp.zeros((v_pad, d_pad), jnp.float32)
        slot_cols, slot_voff = [], []
        self._col_ranges = {}
        v_off = d_off = 0
        for name in names:
            vocab, dim = self.embedding_sizes[name]
            fused = fused.at[v_off:v_off + vocab, d_off:d_off + dim].set(
                self.tables[name])
            self._col_ranges[name] = (d_off, dim)
            if name in self.categorical_groups:
                for cat in self.categorical_groups[name]:
                    slot_cols.append(self.x_categoricals.index(cat))
                    slot_voff.append(v_off)
            else:
                slot_cols.append(self.x_categoricals.index(name))
                slot_voff.append(v_off)
            v_off += vocab
            d_off += dim

        self._fused_table = fused
        self._d_total = d_total
        self._slot_cols = jnp.array(slot_cols, dtype=jnp.int32)
        self._slot_voff = jnp.array(slot_voff, dtype=jnp.int32)

    def total_embedding_size(self) -> int:
        return sum(size[1] for size in self.embedding_sizes.values())

    def __call__(self, x: jax.Array, flat: bool = False):
        lead = x.shape[:-1]
        n = math.prod(lead) if lead else 1
        x_flat = x.reshape(n, x.shape[-1]).astype(jnp.int32)

        # gather lookup columns and offset into the fused vocabulary (cheap XLA glue)
        ids = jnp.take(x_flat, self._slot_cols, axis=1) + self._slot_voff[None, :]

        # one fused kernel call: every table's lookup, already concatenated
        fused_out = _fused_lookup_pallas(ids, self._fused_table, self._d_total)

        if flat:
            return fused_out.reshape(*lead, self._d_total)

        out = {}
        for name, (d0, dim) in self._col_ranges.items():
            out[name] = fused_out[:, d0:d0 + dim].reshape(*lead, dim)
        return out


# ----------------------------------------------------------------------------
# Pure-JAX reference mirroring the PyTorch forward
# ----------------------------------------------------------------------------
def _reference_forward(module: MultiEmbedding, x: jax.Array, flat: bool = False):
    out = {}
    for name, tbl in module.tables.items():
        if name in module.categorical_groups:
            cols = [module.x_categoricals.index(c)
                    for c in module.categorical_groups[name]]
            ids = jnp.take(x, jnp.array(cols), axis=-1)          # (..., g)
            out[name] = jnp.take(tbl, ids, axis=0).sum(axis=-2)  # EmbeddingBag 'sum'
        else:
            idx = module.x_categoricals.index(name)
            out[name] = jnp.take(tbl, x[..., idx], axis=0)       # nn.Embedding
    if flat:
        return jnp.concatenate(list(out.values()), axis=-1)
    return out


if __name__ == "__main__":
    key = jax.random.PRNGKey(0)
    k_tables, k_a, k_b, k_g1, k_g2 = jax.random.split(key, 5)

    embedding_sizes = {"cat_a": (10, 8), "cat_b": (7, 4), "group_g": (12, 32)}
    categorical_groups = {"group_g": ["g1", "g2"]}
    embedding_paddings = ["cat_b"]
    x_categoricals = ["cat_a", "cat_b", "g1", "g2"]

    module = MultiEmbedding(
        embedding_sizes, categorical_groups, embedding_paddings, x_categoricals,
        max_embedding_size=16, key=k_tables)   # group_g dim clamps 32 -> 16

    batch, seq = 2, 8
    xa = jax.random.randint(k_a, (batch, seq, 1), 0, 10)
    xb = jax.random.randint(k_b, (batch, seq, 1), 0, 7)
    xg1 = jax.random.randint(k_g1, (batch, seq, 1), 0, 12)
    xg2 = jax.random.randint(k_g2, (batch, seq, 1), 0, 12)
    x = jnp.concatenate([xa, xb, xg1, xg2], axis=-1).astype(jnp.int32)  # (2, 8, 4)

    out = jax.block_until_ready(module(x, flat=False))
    out_flat = jax.block_until_ready(module(x, flat=True))

    ref = _reference_forward(module, x, flat=False)
    ref_flat = _reference_forward(module, x, flat=True)

    for name in ref:
        assert out[name].shape == ref[name].shape, name
        assert out[name].dtype == jnp.float32, name
        assert jnp.allclose(out[name], ref[name], atol=1e-5, rtol=1e-5), name

    assert out_flat.shape == (batch, seq, module.total_embedding_size())
    assert jnp.allclose(out_flat, ref_flat, atol=1e-5, rtol=1e-5)

    print("KERNEL_OK")
</pallas_src>

<mosaic_0001>
module attributes {stable_mosaic.version = 11 : i64} {
  func.func @_fused_embedding_kernel(%arg0: i32, %arg1: memref<16x4xi32, #tpu.memory_space<vmem>>, %arg2: memref<128x128xf32, #tpu.memory_space<vmem>>, %arg3: memref<16x128xf32, #tpu.memory_space<vmem>>) attributes {dimension_semantics = [#tpu.dimension_semantics<parallel>], iteration_bounds = array<i64: 1>, scalar_prefetch = 0 : i64, scratch_operands = 0 : i64, tpu.core_type = #tpu.core_type<tc>, window_params = [{transform_indices = @transform_0, window_bounds = array<i64: 16, 4>}, {pipeline_mode = #tpu.pipeline_mode<synchronous>, transform_indices = @transform_1, window_bounds = array<i64: 128, 128>}, {transform_indices = @transform_2, window_bounds = array<i64: 16, 128>}]} {
    %0 = tpu.iota {dimensions = array<i32: 1>} : vector<16x128xi32>
    %c0 = arith.constant 0 : index
    %c0_0 = arith.constant 0 : index
    %1 = vector.load %arg1[%c0, %c0_0] : memref<16x4xi32, #tpu.memory_space<vmem>>, vector<16x1xi32>
    %2 = vector.broadcast %1 : vector<16x1xi32> to vector<16x128xi32>
    %3 = arith.cmpi eq, %2, %0 : vector<16x128xi32>
    %4 = arith.extui %3 : vector<16x128xi1> to vector<16x128xi32>
    %5 = arith.sitofp %4 : vector<16x128xi32> to vector<16x128xf32>
    %c0_1 = arith.constant 0 : index
    %c1 = arith.constant 1 : index
    %6 = vector.load %arg1[%c0_1, %c1] : memref<16x4xi32, #tpu.memory_space<vmem>>, vector<16x1xi32>
    %7 = vector.broadcast %6 : vector<16x1xi32> to vector<16x128xi32>
    %8 = arith.cmpi eq, %7, %0 : vector<16x128xi32>
    %9 = arith.extui %8 : vector<16x128xi1> to vector<16x128xi32>
    %10 = arith.sitofp %9 : vector<16x128xi32> to vector<16x128xf32>
    %11 = arith.addf %5, %10 : vector<16x128xf32>
    %c0_2 = arith.constant 0 : index
    %c2 = arith.constant 2 : index
    %12 = vector.load %arg1[%c0_2, %c2] : memref<16x4xi32, #tpu.memory_space<vmem>>, vector<16x1xi32>
    %13 = vector.broadcast %12 : vector<16x1xi32> to vector<16x128xi32>
    %14 = arith.cmpi eq, %13, %0 : vector<16x128xi32>
    %15 = arith.extui %14 : vector<16x128xi1> to vector<16x128xi32>
    %16 = arith.sitofp %15 : vector<16x128xi32> to vector<16x128xf32>
    %17 = arith.addf %11, %16 : vector<16x128xf32>
    %c0_3 = arith.constant 0 : index
    %c3 = arith.constant 3 : index
    %18 = vector.load %arg1[%c0_3, %c3] : memref<16x4xi32, #tpu.memory_space<vmem>>, vector<16x1xi32>
    %19 = vector.broadcast %18 : vector<16x1xi32> to vector<16x128xi32>
    %20 = arith.cmpi eq, %19, %0 : vector<16x128xi32>
    %21 = arith.extui %20 : vector<16x128xi1> to vector<16x128xi32>
    %22 = arith.sitofp %21 : vector<16x128xi32> to vector<16x128xf32>
    %23 = arith.addf %17, %22 : vector<16x128xf32>
    %c0_4 = arith.constant 0 : index
    %c0_5 = arith.constant 0 : index
    %24 = vector.load %arg2[%c0_4, %c0_5] : memref<128x128xf32, #tpu.memory_space<vmem>>, vector<128x128xf32>
    %cst = arith.constant dense<0.000000e+00> : vector<16x128xf32>
    %25 = tpu.matmul %23, %24, %cst {dimension_numbers = #tpu.dot_dimension_numbers<[1], [0], [0], [1], [0, 0, 1, 1], [], []>} : vector<16x128xf32>, vector<128x128xf32>, vector<16x128xf32> -> vector<16x128xf32>
    %c0_6 = arith.constant 0 : index
    %c0_7 = arith.constant 0 : index
    %26 = vector.load %arg3[%c0_6, %c0_7] : memref<16x128xf32, #tpu.memory_space<vmem>>, vector<16x128xf32>
    tpu.vector_store %arg3[%c0_6, %c0_7], %25 {strides = array<i32>} : memref<16x128xf32, #tpu.memory_space<vmem>>, vector<16x128xf32>,
    return
  }
  func.func @transform_0(%arg0: i32) -> (i32, i32) {
    %c0_i32 = arith.constant 0 : i32
    %c0_i32_0 = arith.constant 0 : i32
    return %arg0, %c0_i32 : i32, i32
  }
  func.func @transform_1(%arg0: i32) -> (i32, i32) {
    %c0_i32 = arith.constant 0 : i32
    %c0_i32_0 = arith.constant 0 : i32
    %c0_i32_1 = arith.constant 0 : i32
    return %c0_i32, %c0_i32_0 : i32, i32
  }
  func.func @transform_2(%arg0: i32) -> (i32, i32) {
    %c0_i32 = arith.constant 0 : i32
    %c0_i32_0 = arith.constant 0 : i32
    return %arg0, %c0_i32 : i32, i32
  }
}

</mosaic_0001>

<bundles_post_ra>
// kernel: tpu_custom_call.1
= control target key start
LH: loop header
LB: loop body
LE: loop exit
PB: predicated region body
PF: predicated region fallthrough
CT: control target
= control target key end

     0   :  { %7 = vsyncpa [#allocation3], 0  ;;  %s358_s0 = inlined_call_operand.vmem [shape: s32[16,4], index: 0, kind: input, shape index: {}]   ;;  %s359_s1 = inlined_call_operand.hbm [shape: f32[128,128], index: 1, kind: input, shape index: {}]   ;;  %s360_s2 = inlined_call_operand.hbm [shape: f32[16,128], index: 2, kind: output, shape index: {}]  }
   0x1   :  { %8 = vsyncpa [#allocation4], 0  ;;  %s316_s9 = smov [#allocation2]  }
   0x2   :  { %s16_s10 = sshll.u32 %s316_s9, 4  ;;  %s17_s10 = int_to_ptr.vmem [resolvable:$true] %s16_s10 }
   0x3   :  { %s280_s11 = scalar_lea.vmem %s17_s10, 2048  ;;  %p285_p1 = scmp.lt.s32.totalorder %s17_s10, %s17_s10 }
   0x4   :  { %p281_p0 = scmp.ne.s32.totalorder %s17_s10, %s280_s11  ;;  %p286_p2 = scmp.lt.s32.totalorder %s280_s11, %s280_s11 }
   0x6   :  { %p287_p3 = por %p286_p2, %p285_p1 }
   0x8   :  { %p288_p4 = pnand %p287_p3, %p281_p0 }
   0xa   :  { %291 = shalt.err (!%p288_p4)
}
   0xb   :  { %s317_s12 = smov 128   ;;  %s318_s13 = smov 8  }
   0xc   :  { %22 = dma.hbm_to_vmem [thread:$0]  %s359_s1, 2048, %s17_s10, [#allocation3], %s317_s12, %s317_s12, %s318_s13  }
   0xd   :  { %312 = dma.done.wait [#allocation3], 2048  }
   0xe   :  { %313 = vsyncadd [#allocation3], 4294965248  ;;  %v319_v0 = vmov 0   ;;  %v29_v1 = vld [vmem:[%s358_s0 + $0x8] sm:$0xff]  ;;  %v28_v2 = vld [vmem:[%s358_s0] sm:$0xff]  ;;  %v320_v5 = vmov 1   ;;  %v26_v22 = vlaneseq }
   0xf   :  { %266 = vset.pattern.permute.xlu1 %v319_v0  ;;  %264 = vset.pattern.permute.xlu0 %v319_v0  ;;  %v99_v3 = vld [vmem:[#allocation2 + $0x78] sm:$0xff]  ;;  %v98_v4 = vld [vmem:[#allocation2 + $0x70] sm:$0xff]  ;;  %v97_v6 = vld [vmem:[#allocation2 + $0x68] sm:$0xff]  ;;  %v321_v8 = vmov 2   ;;  %v322_v11 = vmov 3   ;;  %v323_v28 = vmov 0.0  }
  0x10   :  { %34 = vperm.xlu1 %266, %v29_v1   ;;  %31 = vperm.xlu0 %264, %v28_v2   ;;  %v96_v7 = vld [vmem:[#allocation2 + $0x60] sm:$0xff]  ;;  %v95_v9 = vld [vmem:[#allocation2 + $0x58] sm:$0xff]  ;;  %v94_v10 = vld [vmem:[#allocation2 + $0x50] sm:$0xff]  ;;  %v27_v25 = vand.u32 127, %v26_v22  ;;  %s324_s0 = smov [#allocation5]  }
  0x11   :  { %220 = vmatprep.subr.mxu0 %v99_v3  ;;  %v93_v12 = vld [vmem:[#allocation2 + $0x48] sm:$0xff]  ;;  %v92_v13 = vld [vmem:[#allocation2 + $0x40] sm:$0xff]  ;;  %v91_v14 = vld [vmem:[#allocation2 + $0x38] sm:$0xff]  ;;  %s182_s1 = sshll.u32 %s324_s0, 4  ;;  %s183_s1 = int_to_ptr.vmem [resolvable:$true] %s182_s1 }
  0x12   :  { %221 = vmatpush3.msra.mxu0 %v99_v3  ;;  %v90_v15 = vld [vmem:[#allocation2 + $0x30] sm:$0xff]  ;;  %v89_v16 = vld [vmem:[#allocation2 + $0x28] sm:$0xff]  ;;  %v88_v17 = vld [vmem:[#allocation2 + $0x20] sm:$0xff]  ;;  %s292_s20 = scalar_lea.vmem %s183_s1, 256  ;;  %p297_p6 = scmp.lt.s32.totalorder %s183_s1, %s183_s1 }
  0x13   :  { %222 = vmatprep.subr.mxu0 %v98_v4  ;;  %v87_v18 = vld [vmem:[#allocation2 + $0x18] sm:$0xff]  ;;  %v86_v19 = vld [vmem:[#allocation2 + $0x10] sm:$0xff]  ;;  %v85_v20 = vld [vmem:[#allocation2 + $0x8] sm:$0xff]  ;;  %p293_p5 = scmp.ne.s32.totalorder %s183_s1, %s292_s20  ;;  %p298_p7 = scmp.lt.s32.totalorder %s292_s20, %s292_s20 }
  0x14   :  { %267 = vset.pattern.permute.xlu1 %v320_v5  ;;  %265 = vset.pattern.permute.xlu0 %v320_v5  ;;  %v84_v21 = vld [vmem:[#allocation2] sm:$0xff] }
  0x15   :  { %46 = vperm.xlu1 %267, %v29_v1   ;;  %43 = vperm.xlu0 %265, %v28_v2   ;;  %p299_p8 = por %p298_p7, %p297_p6 }
  0x16   :  { %223 = vmatpush3.msra.mxu0 %v98_v4 }
  0x17   :  { %224 = vmatprep.subr.mxu0 %v97_v6  ;;  %p300_p9 = pnand %p299_p8, %p293_p5 }
  0x18   :  { %225 = vmatpush3.msra.mxu0 %v97_v6 }
  0x19   :  { %268 = vset.pattern.permute.xlu1 %v321_v8  ;;  %269 = vset.pattern.permute.xlu0 %v321_v8 }
  0x1a   :  { %57 = vperm.xlu1 %268, %v28_v2   ;;  %60 = vperm.xlu0 %269, %v29_v1  }
  0x1b   :  { %226 = vmatprep.subr.mxu0 %v96_v7 }
  0x1c   :  { %227 = vmatpush3.msra.mxu0 %v96_v7 }
  0x1d   :  { %228 = vmatprep.subr.mxu0 %v95_v9 }
  0x1e   :  { %270 = vset.pattern.permute.xlu1 %v322_v11  ;;  %229 = vmatpush3.msra.mxu0 %v95_v9 }
  0x1f   :  { %71 = vperm.xlu1 %270, %v28_v2   ;;  %230 = vmatprep.subr.mxu0 %v94_v10 }
  0x20   :  { %231 = vmatpush3.msra.mxu0 %v94_v10  ;;  %271 = vset.pattern.permute.xlu0 %v322_v11 }
  0x21   :  { %232 = vmatprep.subr.mxu0 %v93_v12 }
  0x22   :  { %233 = vmatpush3.msra.mxu0 %v93_v12 }
  0x23   :  { %74 = vperm.xlu1 %270, %v29_v1   ;;  %234 = vmatprep.subr.mxu0 %v92_v13 }
  0x24   :  { %235 = vmatpush3.msra.mxu0 %v92_v13 }
  0x25   :  { %236 = vmatprep.subr.mxu0 %v91_v14 }
  0x26   :  { %237 = vmatpush3.msra.mxu0 %v91_v14 }
  0x27   :  { %238 = vmatprep.subr.mxu0 %v90_v15 }
  0x28   :  { %239 = vmatpush3.msra.mxu0 %v90_v15 }
  0x29   :  { %240 = vmatprep.subr.mxu0 %v89_v16 }
  0x2a   :  { %241 = vmatpush3.msra.mxu0 %v89_v16 }
  0x2b   :  { %242 = vmatprep.subr.mxu0 %v88_v17 }
  0x2c   :  { %243 = vmatpush3.msra.mxu0 %v88_v17 }
  0x2d   :  { %244 = vmatprep.subr.mxu0 %v87_v18 }
  0x2e   :  { %245 = vmatpush3.msra.mxu0 %v87_v18 }
  0x2f   :  { %246 = vmatprep.subr.mxu0 %v86_v19 }
  0x30   :  { %247 = vmatpush3.msra.mxu0 %v86_v19 }
  0x31   :  { %248 = vmatprep.subr.mxu0 %v85_v20 }
  0x32   :  { %249 = vmatpush3.msra.mxu0 %v85_v20 }
  0x33   :  { %250 = vmatprep.subr.mxu0 %v84_v21 }
  0x34   :  { %251 = vmatpush3.msra.mxu0 %v84_v21 }
  0x8b   :  { %v35_v23 = vpop.permute.xlu1 %34  ;;  %v32_v24 = vpop.permute.xlu0 %31 }
  0x8c   :  { %vm36_vm0 = vcmp.eq.s32.totalorder %v32_v24, %v27_v25  ;;  %vm37_vm4 = vcmp.eq.s32.totalorder %v35_v23, %v27_v25 }
  0x8d   :  { %v194_v29 = vsel %vm36_vm0, 1.0, %v323_v28  ;;  %v195_v38 = vsel %vm37_vm4, 1.0, %v323_v28 }
  0x90   :  { %v47_v26 = vpop.permute.xlu1 %46  ;;  %v44_v27 = vpop.permute.xlu0 %43 }
  0x91   :  { %vm48_vm1 = vcmp.eq.s32.totalorder %v44_v27, %v27_v25  ;;  %vm49_vm3 = vcmp.eq.s32.totalorder %v47_v26, %v27_v25 }
  0x92   :  { %v196_v30 = vsel %vm48_vm1, 1.0, %v323_v28  ;;  %v197_v35 = vsel %vm49_vm3, 1.0, %v323_v28 }
  0x93   :  { %v54_v33 = vadd.f32 %v196_v30, %v194_v29  ;;  %v55_v41 = vadd.f32 %v197_v35, %v195_v38 }
  0x95   :  { %v58_v31 = vpop.permute.xlu1 %57  ;;  %v61_v32 = vpop.permute.xlu0 %60 }
  0x96   :  { %vm62_vm2 = vcmp.eq.s32.totalorder %v58_v31, %v27_v25  ;;  %vm63_vm5 = vcmp.eq.s32.totalorder %v61_v32, %v27_v25 }
  0x97   :  { %v198_v34 = vsel %vm62_vm2, 1.0, %v323_v28  ;;  %v199_v39 = vsel %vm63_vm5, 1.0, %v323_v28 }
  0x98   :  { %v68_v37 = vadd.f32 %v198_v34, %v54_v33  ;;  %v69_v44 = vadd.f32 %v199_v39, %v55_v41 }
  0x9a   :  { %v72_v36 = vpop.permute.xlu1 %71 }
  0x9b   :  { %vm76_vm6 = vcmp.eq.s32.totalorder %v72_v36, %v27_v25 }
  0x9c   :  { %v200_v40 = vsel %vm76_vm6, 1.0, %v323_v28 }
  0x9d   :  { %v82_v42 = vadd.f32 %v200_v40, %v68_v37 }
  0x9e   :  { %v75_v43 = vpop.permute.xlu1 %74 }
  0x9f   :  { %vm77_vm7 = vcmp.eq.s32.totalorder %v75_v43, %v27_v25  ;;  %252 = vmatprep.mubr.f32.mxu0 %v82_v42 }
  0xa0   :  { %v201_v45 = vsel %vm77_vm7, 1.0, %v323_v28 }
  0xa1   :  { %v83_v46 = vadd.f32 %v201_v45, %v69_v44 }
  0xa3   :  { %253 = vmatmul.mubr.f32.vlgmr.msra.gmra.mxu0 %v83_v46 }
 0x163   :  { %v254_v47 = vpop.f32.mrf.mxu0 }
 0x164   :  { %176 = vst [vmem:[#allocation5 + $0x8] sm:$0xff] %v254_v47 }
 0x165   :  { %v166_v48 = vpop.f32.mrf.mxu0 }
 0x166   :  { %175 = vst [vmem:[#allocation5] sm:$0xff] %v166_v48 }
 0x167   :  { %303 = shalt.err (!%p300_p9)
}
 0x168   :  { %188 = dma.vmem_to_hbm [thread:$0]  %s183_s1, 256, %s360_s2, [#allocation4], %s317_s12, %s317_s12, %s318_s13  }
 0x169   :  { %314 = dma.done.wait [#allocation4], 256  }
 0x16a   :  { %315 = vsyncadd [#allocation4], 4294967040 }
 0x16b   :  { %192 = vsyncpa [#allocation3], 1 }
 0x16c   :  { %193 = vsyncpa [#allocation4], 1 }

</bundles_post_ra>
